<compile_context>
chip_gen: v6e
topology: v6e:2x2x1
jax: 0.10.0
libtpu: 0.0.40
codegen_flags: <defaults>
</compile_context>

<pallas_src>
import math

import jax
import jax.numpy as jnp
from jax.experimental import pallas as pl
from jax.experimental.pallas import tpu as pltpu


def _add_bias_kernel(x_ref, b_ref, o_ref):
    # x_ref: (TM, TL) tile; b_ref: (1, TL) shared bias row OR (TM, 1) per-row
    # bias column.  Either way it is a single VPU broadcast add.
    o_ref[...] = x_ref[...] + b_ref[...]


_DEFAULT_VMEM_CAPACITY = 64 << 20      # v7x per-TC VMEM -- the most conservative
_PALLAS_MIN_ELEMENTS = 1 << 20         # below this, fused XLA add wins


def _vmem_capacity_bytes():
    """Physical VMEM of the current chip (fallback: v7x's 64 MiB)."""
    try:
        info = pltpu.get_tpu_info()
        cap = getattr(info, "vmem_capacity_bytes", None)
        if cap:
            return int(cap)
    except Exception:
        pass
    return _DEFAULT_VMEM_CAPACITY


def _sublane_multiple(itemsize):
    # 8 rows/vreg for 4-byte types, 16 for bf16/f16, 32 for int8/fp8.
    return 8 * max(1, 4 // max(1, itemsize))


def _fold_factor(d):
    """Smallest k such that k*d is a multiple of 128 lanes."""
    return 128 // math.gcd(d, 128)


def _pick_tiles(m, l, itemsize, max_block_bytes=None):
    """Choose a (tm, tl) tile for an (M, L) streaming elementwise op.

    x is double-buffered and out is double-buffered, so four resident blocks
    (plus the tiny bias block) must fit under the chip's VMEM with headroom.
    """
    sub = _sublane_multiple(itemsize)
    cap = _vmem_capacity_bytes()
    budget = int(cap * 0.6)                       # headroom for Mosaic scratch
    target = min(8 << 20, budget // 4)            # per-block byte target
    if max_block_bytes is not None:
        target = min(target, int(max_block_bytes))
    target = max(target, sub * 128 * itemsize)    # never below one packed vreg tile

    row_bytes = l * itemsize
    if sub * row_bytes <= target:
        # Full-width rows; tile along rows only.
        tl = l
        tm = (target // row_bytes) // sub * sub
        tm = min(m, max(sub, tm))
    else:
        # Very wide rows: minimum legal sublane count, tile the lane axis in
        # 128-multiples so pipelining depth survives (and v7x VMEM fits).
        tm = min(m, sub)
        tl = (target // (max(1, tm) * itemsize)) // 128 * 128
        tl = min(l, max(128, tl))
    return tm, tl, sub


def _pallas_broadcast_add(x2d, bias2d, *, row_tile=None, donate=False,
                          max_block_bytes=None):
    """x2d: (M, L).  bias2d: (1, L) shared bias row or (M, 1) per-row bias
    column.  Returns x2d + bias2d (broadcast), computed in (tm, tl) tiles."""
    m, l = x2d.shape
    itemsize = jnp.dtype(x2d.dtype).itemsize
    tm, tl, sub = _pick_tiles(m, l, itemsize, max_block_bytes)

    if row_tile is not None:
        # Round the user tile down to the sublane multiple so the (8,128)
        # block-divisibility rule holds whenever tm < M.
        tm = min(m, max(sub, (int(row_tile) // sub) * sub))
    elif pl.cdiv(m, tm) * pl.cdiv(l, tl) == 1 and m >= 2 * sub:
        # Megacore / v7x: make sure the "parallel" grid has >= 2 blocks so
        # both TensorCores (and both sets of DMA engines) get work.
        half = (m + 1) // 2
        tm = ((half + sub - 1) // sub) * sub

    grid = (pl.cdiv(m, tm), pl.cdiv(l, tl))

    shared_row = bias2d.shape[0] == 1
    if shared_row:
        b_spec = pl.BlockSpec((1, tl), lambda i, j: (0, j))
        bias_block_elems = tl
    else:
        b_spec = pl.BlockSpec((tm, 1), lambda i, j: (i, 0))
        bias_block_elems = tm

    block_bytes = tm * tl * itemsize
    bias_bytes = bias2d.size * jnp.dtype(bias2d.dtype).itemsize
    # in + out double-buffered, bias double-buffered, plus compiler scratch.
    needed = 4 * block_bytes + 2 * bias_block_elems * itemsize + (2 << 20)
    vmem_limit = int(min(max(needed, 16 << 20), _vmem_capacity_bytes() * 0.9))

    return pl.pallas_call(
        _add_bias_kernel,
        out_shape=jax.ShapeDtypeStruct((m, l), x2d.dtype),
        grid=grid,
        in_specs=[
            pl.BlockSpec((tm, tl), lambda i, j: (i, j)),
            b_spec,
        ],
        out_specs=pl.BlockSpec((tm, tl), lambda i, j: (i, j)),
        input_output_aliases={0: 0} if donate else {},
        compiler_params=pltpu.CompilerParams(
            dimension_semantics=("parallel", "parallel"),
            vmem_limit_bytes=vmem_limit),
        cost_estimate=pl.CostEstimate(
            flops=m * l,
            transcendentals=0,
            bytes_accessed=2 * m * l * itemsize + bias_bytes),
    )(x2d, bias2d)


class AddBiasPallas:
    """JAX/Pallas equivalent of the PyTorch AddBias module."""

    def __init__(self, bias_vec):
        # PyTorch stores bias.unsqueeze(1) -> (D, 1); forward always uses the
        # transposed / reshaped view, so keep the canonical 1-D vector.
        self._bias_vec = jnp.asarray(bias_vec).reshape(-1)

    def __call__(self, x, *, force_pallas=False, row_tile=None, donate=False):
        b = self._bias_vec.astype(x.dtype)

        if x.ndim == 2:
            n, d = x.shape
            if not force_pallas and x.size < _PALLAS_MIN_ELEMENTS:
                return x + b.reshape(1, d)
            x2d, bias_row, out_shape = x, b.reshape(1, d), None
            if d % 128 != 0:
                # Fold k consecutive rows into the lane axis so stores use
                # full 128-lane vregs (unmasked vst) when N allows it.
                k = _fold_factor(d)
                if k > 1 and n % k == 0:
                    x2d = x.reshape(n // k, k * d)
                    bias_row = jnp.tile(b, k).reshape(1, k * d)
                    out_shape = (n, d)
            y = _pallas_broadcast_add(x2d, bias_row,
                                      row_tile=row_tile, donate=donate)
            return y.reshape(out_shape) if out_shape is not None else y

        elif x.ndim == 4:
            n, c, h, w = x.shape
            if not force_pallas and x.size < _PALLAS_MIN_ELEMENTS:
                return x + b.reshape(1, c, 1, 1)
            hw = h * w
            if hw % 128 == 0:
                # Already lane-dense: (N*C, H*W) rows + tiny per-row bias col.
                x2d = x.reshape(n * c, hw)
                bias_col = jnp.tile(b, n).reshape(n * c, 1)
                y2d = _pallas_broadcast_add(x2d, bias_col,
                                            row_tile=row_tile, donate=donate)
            else:
                # 7x7 / 14x14-style maps: fold channels into the lane axis so
                # only the final partial lane group per row is masked.
                x2d = x.reshape(n, c * hw)
                bias_row = jnp.repeat(b, hw).reshape(1, c * hw)
                y2d = _pallas_broadcast_add(x2d, bias_row,
                                            row_tile=row_tile, donate=donate)
            return y2d.reshape(n, c, h, w)

        else:
            raise ValueError(f"AddBias expects 2-D or 4-D input, got {x.ndim}-D")


if __name__ == "__main__":
    key = jax.random.PRNGKey(0)
    k_bias, k_x2, k_x2f, k_x2r, k_x4, k_x4o, k_xw = jax.random.split(key, 7)

    # ---- 2-D: (N, D) = (2, 32), bias has D entries ----
    D = 32
    bias = jax.random.normal(k_bias, (D,), dtype=jnp.float32)
    module = AddBiasPallas(bias)

    x2 = jax.random.normal(k_x2, (2, D), dtype=jnp.float32)
    y2 = module(x2, force_pallas=True)
    jax.block_until_ready(y2)
    assert jnp.allclose(y2, x2 + bias.reshape(1, -1), atol=1e-6), "2-D mismatch"

    # ---- 2-D, (64, 32): rows fold into lanes -> (16, 128), grid split in 2 ----
    x2f = jax.random.normal(k_x2f, (64, D), dtype=jnp.float32)
    y2f = module(x2f, force_pallas=True)
    jax.block_until_ready(y2f)
    assert jnp.allclose(y2f, x2f + bias.reshape(1, -1), atol=1e-6), "fold mismatch"

    # ---- 2-D, (50, 32): user row_tile with ragged edge block ----
    x2r = jax.random.normal(k_x2r, (50, D), dtype=jnp.float32)
    y2r = module(x2r, force_pallas=True, row_tile=16)
    jax.block_until_ready(y2r)
    assert jnp.allclose(y2r, x2r + bias.reshape(1, -1), atol=1e-6), "tiled mismatch"

    # ---- 4-D NCHW, H*W a 128-multiple: (2, 4, 16, 16) ----
    C = 4
    bias4 = jax.random.normal(k_bias, (C,), dtype=jnp.float32)
    module4 = AddBiasPallas(bias4)

    x4 = jax.random.normal(k_x4, (2, C, 16, 16), dtype=jnp.float32)
    y4 = module4(x4, force_pallas=True)
    jax.block_until_ready(y4)
    assert jnp.allclose(y4, x4 + bias4.reshape(1, C, 1, 1), atol=1e-6), "4-D mismatch"

    # ---- 4-D NCHW, H*W NOT a 128-multiple (7x7): shared (1, C*H*W) bias row ----
    x4o = jax.random.normal(k_x4o, (2, C, 7, 7), dtype=jnp.float32)
    y4o = module4(x4o, force_pallas=True)
    jax.block_until_ready(y4o)
    assert jnp.allclose(y4o, x4o + bias4.reshape(1, C, 1, 1), atol=1e-6), "7x7 mismatch"

    # ---- wide-row path: force the lane-axis grid with a small block budget ----
    xw = jax.random.normal(k_xw, (16, 512), dtype=jnp.float32)
    bw = jax.random.normal(k_bias, (512,), dtype=jnp.float32)
    yw = _pallas_broadcast_add(xw, bw.reshape(1, 512), max_block_bytes=8 * 1024)
    jax.block_until_ready(yw)
    assert jnp.allclose(yw, xw + bw.reshape(1, -1), atol=1e-6), "col-tile mismatch"

    # ---- small-input fallback (plain jnp) still matches ----
    y4_small = module4(x4)
    jax.block_until_ready(y4_small)
    assert jnp.allclose(y4_small, x4 + bias4.reshape(1, C, 1, 1), atol=1e-6), \
        "fallback mismatch"

    print("KERNEL_OK")
</pallas_src>

<mosaic_0001>
module attributes {stable_mosaic.version = 11 : i64} {
  func.func @_add_bias_kernel(%arg0: i32, %arg1: i32, %arg2: memref<2x32xf32, #tpu.memory_space<vmem>>, %arg3: memref<1x32xf32, #tpu.memory_space<vmem>>, %arg4: memref<2x32xf32, #tpu.memory_space<vmem>>) attributes {dimension_semantics = [#tpu.dimension_semantics<parallel>, #tpu.dimension_semantics<parallel>], iteration_bounds = array<i64: 1, 1>, scalar_prefetch = 0 : i64, scratch_operands = 0 : i64, tpu.core_type = #tpu.core_type<tc>, window_params = [{transform_indices = @transform_0, window_bounds = array<i64: 2, 32>}, {transform_indices = @transform_1, window_bounds = array<i64: 1, 32>}, {transform_indices = @transform_2, window_bounds = array<i64: 2, 32>}]} {
    %c0 = arith.constant 0 : index
    %c0_0 = arith.constant 0 : index
    %0 = vector.load %arg2[%c0, %c0_0] : memref<2x32xf32, #tpu.memory_space<vmem>>, vector<2x32xf32>
    %c0_1 = arith.constant 0 : index
    %c0_2 = arith.constant 0 : index
    %1 = vector.load %arg3[%c0_1, %c0_2] : memref<1x32xf32, #tpu.memory_space<vmem>>, vector<1x32xf32>
    %2 = vector.broadcast %1 : vector<1x32xf32> to vector<2x32xf32>
    %3 = arith.addf %0, %2 : vector<2x32xf32>
    %c0_3 = arith.constant 0 : index
    %c0_4 = arith.constant 0 : index
    %4 = vector.load %arg4[%c0_3, %c0_4] : memref<2x32xf32, #tpu.memory_space<vmem>>, vector<2x32xf32>
    tpu.vector_store %arg4[%c0_3, %c0_4], %3 {strides = array<i32>} : memref<2x32xf32, #tpu.memory_space<vmem>>, vector<2x32xf32>,
    return
  }
  func.func @transform_0(%arg0: i32, %arg1: i32) -> (i32, i32) {
    %c0_i32 = arith.constant 0 : i32
    return %arg0, %arg1 : i32, i32
  }
  func.func @transform_1(%arg0: i32, %arg1: i32) -> (i32, i32) {
    %c0_i32 = arith.constant 0 : i32
    %c0_i32_0 = arith.constant 0 : i32
    return %c0_i32, %arg1 : i32, i32
  }
  func.func @transform_2(%arg0: i32, %arg1: i32) -> (i32, i32) {
    %c0_i32 = arith.constant 0 : i32
    return %arg0, %arg1 : i32, i32
  }
}

</mosaic_0001>

<bundles_post_ra>
// kernel: tpu_custom_call.1
= control target key start
LH: loop header
LB: loop body
LE: loop exit
PB: predicated region body
PF: predicated region fallthrough
CT: control target
= control target key end

     0   :  { %7 = vsyncpa [#allocation3], 0  ;;  %s123_s0 = inlined_call_operand.hbm [shape: f32[2,32], index: 0, kind: input, shape index: {}]   ;;  %s124_s1 = inlined_call_operand.vmem [shape: f32[1,32], index: 1, kind: input, shape index: {}]   ;;  %s125_s2 = inlined_call_operand.hbm [shape: f32[2,32], index: 2, kind: output, shape index: {}]  }
   0x1   :  { %8 = vsyncpa [#allocation4], 0  ;;  %s97_s9 = smov [#allocation2]  }
   0x2   :  { %s15_s10 = sshll.u32 %s97_s9, 4  ;;  %s16_s10 = int_to_ptr.vmem [resolvable:$true] %s15_s10 }
   0x3   :  { %s61_s11 = scalar_lea.vmem %s16_s10, 32  ;;  %p66_p1 = scmp.lt.s32.totalorder %s16_s10, %s16_s10 }
   0x4   :  { %p62_p0 = scmp.ne.s32.totalorder %s16_s10, %s61_s11  ;;  %p67_p2 = scmp.lt.s32.totalorder %s61_s11, %s61_s11 }
   0x6   :  { %p68_p3 = por %p67_p2, %p66_p1 }
   0x8   :  { %p69_p4 = pnand %p68_p3, %p62_p0 }
   0xa   :  { %72 = shalt.err (!%p69_p4)
}
   0xb   :  { %18 = dma.hbm_to_vmem [thread:$0]  %s123_s0, 32, %s16_s10, [#allocation3]  }
   0xc   :  { %93 = dma.done.wait [#allocation3], 32  }
   0xd   :  { %94 = vsyncadd [#allocation3], 4294967264  ;;  %s98_s14 = smov [#allocation5]   ;;  %v24_v0 = vld [vmem:[#allocation2] sm:$0x3]  ;;  %vm33_vm0 = vcmask 254976  }
   0xe   :  { %s41_s15 = sshll.u32 %s98_s14, 4  ;;  %v50_v1 = vld [vmem:[%s124_s1] ss:$0 sm:$0xff]  ;;  %s42_s15 = int_to_ptr.vmem [resolvable:$true] %s41_s15 }
   0xf   :  { %v32_v2 = vadd.f32 %v50_v1, %v24_v0  ;;  %s73_s18 = scalar_lea.vmem %s42_s15, 32  ;;  %p78_p6 = scmp.lt.s32.totalorder %s42_s15, %s42_s15 }
  0x10   :  { %p74_p5 = scmp.ne.s32.totalorder %s42_s15, %s73_s18  ;;  %p79_p7 = scmp.lt.s32.totalorder %s73_s18, %s73_s18 }
  0x11   :  { %34 = vst.msk [vmem:[#allocation5] sm:$0x3] %vm33_vm0, %v32_v2 }
  0x12   :  { %p80_p8 = por %p79_p7, %p78_p6 }
  0x14   :  { %p81_p9 = pnand %p80_p8, %p74_p5 }
  0x16   :  { %84 = shalt.err (!%p81_p9)
}
  0x17   :  { %44 = dma.vmem_to_hbm [thread:$0]  %s42_s15, 32, %s125_s2, [#allocation4]  }
  0x18   :  { %95 = dma.done.wait [#allocation4], 32  }
  0x19   :  { %96 = vsyncadd [#allocation4], 4294967264 }
  0x1a   :  { %48 = vsyncpa [#allocation3], 1 }
  0x1b   :  { %49 = vsyncpa [#allocation4], 1 }

</bundles_post_ra>
